<compile_context>
chip_gen: v5e
topology: v5e:2x2
jax: 0.10.0
libtpu: 0.0.40
codegen_flags: <defaults>
</compile_context>

<pallas_src>
import functools

import jax
import jax.numpy as jnp
from jax.experimental import pallas as pl
from jax.experimental.pallas import tpu as pltpu


def _round_up(x: int, m: int) -> int:
    return ((x + m - 1) // m) * m


def _num_tensorcores() -> int:
    """Best-effort TensorCores-per-chip: v5e/v6e -> 1, v7x (and v4-style) -> 2."""
    try:
        kind = jax.devices()[0].device_kind.lower()
    except Exception:  # pragma: no cover - device query should not fail
        return 1
    if "v5" in kind or "v6" in kind:
        return 1
    return 2


def se_scale_conv1x1_kernel(s_ref, w_ref, x_ref, o_ref, *, compute_dtype):
    # s_ref : (1, Cin)     per-channel gate logits (pre-sigmoid), native dtype
    # w_ref : (Cout, Cin)  1x1 conv weight (OIHW flattened), native dtype
    # x_ref : (Cin, TM)    activation tile (native dtype; cast in-kernel)
    # o_ref : (Cout, TM)   lane-dense output tile
    gate = jax.nn.sigmoid(s_ref[...].astype(jnp.float32))               # (1, Cin), EUP
    # Fold the gate into the tiny (Cout, Cin) weight instead of the big tile
    # (exact up to rounding order: (x*g) @ W^T == x @ (g*W)^T).
    ws = (w_ref[...].astype(jnp.float32) * gate).astype(compute_dtype)  # (Cout, Cin)
    # Cast the activation on the VPU inside the kernel (free under DMA) so the
    # wrapper never materializes a casted/padded copy in HBM.
    x = x_ref[...].astype(compute_dtype)                                 # (Cin, TM)
    o_ref[...] = jnp.dot(ws, x, preferred_element_type=jnp.float32).astype(o_ref.dtype)


def se_scale_conv1x1(x_nchw, s_nc11, w_oihw, *, compute_dtype=jnp.bfloat16,
                     out_dtype=None, tile_m=None):
    """sigmoid(s) * x followed by a 1x1 conv (no bias). NCHW in / NCHW out."""
    N, Cin, H, W = x_nchw.shape
    Cout = w_oihw.shape[0]
    M = H * W
    out_dtype = x_nchw.dtype if out_dtype is None else out_dtype

    # Generation-aware spatial tiling.
    if tile_m is None:
        n_tc = _num_tensorcores()
        if n_tc <= 1 or M <= 256:
            grid_m, tile_m = 1, M                      # one whole-M tile (full-dim block)
        else:
            tile_m = _round_up(pl.cdiv(M, n_tc), 128)  # lane-aligned split for 2 TCs
            grid_m = pl.cdiv(M, tile_m)
    else:
        grid_m = pl.cdiv(M, tile_m)

    # Wrapper does reshapes only (free): no cast, no pad, no transpose.
    x_flat = x_nchw.reshape(N, Cin, M)
    s_flat = s_nc11.reshape(N, 1, Cin)
    w_mat = w_oihw.reshape(Cout, Cin)

    cost = pl.CostEstimate(
        flops=2 * N * Cout * Cin * M,
        transcendentals=N * Cin,
        bytes_accessed=(N * Cin * M * jnp.dtype(x_nchw.dtype).itemsize
                        + Cout * Cin * jnp.dtype(w_oihw.dtype).itemsize
                        + N * Cin * jnp.dtype(s_nc11.dtype).itemsize
                        + N * Cout * M * jnp.dtype(out_dtype).itemsize),
    )

    kernel = functools.partial(se_scale_conv1x1_kernel, compute_dtype=compute_dtype)

    out_flat = pl.pallas_call(
        kernel,
        out_shape=jax.ShapeDtypeStruct((N, Cout, M), out_dtype),
        grid_spec=pltpu.PrefetchScalarGridSpec(
            num_scalar_prefetch=0,
            grid=(N, grid_m),
            in_specs=[
                pl.BlockSpec((None, 1, Cin), lambda n, m: (n, 0, 0)),       # gate logits
                pl.BlockSpec((Cout, Cin), lambda n, m: (0, 0)),             # weight
                pl.BlockSpec((None, Cin, tile_m), lambda n, m: (n, 0, m)),  # activations
            ],
            out_specs=pl.BlockSpec((None, Cout, tile_m), lambda n, m: (n, 0, m)),
        ),
        compiler_params=pltpu.CompilerParams(
            dimension_semantics=("parallel", "parallel"),
        ),
        cost_estimate=cost,
    )(s_flat, w_mat, x_flat)

    # Pure reshape back to NCHW (no padding was added, nothing to slice off).
    return out_flat.reshape(N, Cout, H, W)


if __name__ == "__main__":
    # Channels fixed by the module's conv (288 -> 48); spatial reduced from
    # 56x56 to 14x14 (M=196 deliberately NOT a multiple of 128 to exercise the
    # full-dim block path and the partial-tail masking path below).
    N, Cin, Cout, H, W = 1, 288, 48, 14, 14

    key = jax.random.PRNGKey(0)
    kx, ks, kw = jax.random.split(key, 3)
    x121 = jax.random.normal(kx, (N, Cin, H, W), dtype=jnp.float32)
    x125 = jax.random.normal(ks, (N, Cin, 1, 1), dtype=jnp.float32)
    w = jax.random.normal(kw, (Cout, Cin, 1, 1), dtype=jnp.float32) * (1.0 / Cin) ** 0.5

    # Plain-JAX reference of the module's forward pass.
    gated = jax.nn.sigmoid(x125) * x121
    ref = jax.lax.conv_general_dilated(
        gated, w, window_strides=(1, 1), padding="VALID",
        dimension_numbers=("NCHW", "OIHW", "NCHW"),
    )

    # fp32 compute path, auto tiling.
    out_f32 = jax.block_until_ready(
        se_scale_conv1x1(x121, x125, w, compute_dtype=jnp.float32))
    assert out_f32.shape == (N, Cout, H, W)
    assert jnp.allclose(out_f32, ref, atol=1e-4, rtol=1e-4)

    # fp32 compute, forced multi-tile grid with a partial (masked) tail block.
    out_tail = jax.block_until_ready(
        se_scale_conv1x1(x121, x125, w, compute_dtype=jnp.float32, tile_m=128))
    assert jnp.allclose(out_tail, ref, atol=1e-4, rtol=1e-4)

    # fp32 compute, forced single whole-M (full-dim, unaligned) tile.
    out_full = jax.block_until_ready(
        se_scale_conv1x1(x121, x125, w, compute_dtype=jnp.float32, tile_m=H * W))
    assert jnp.allclose(out_full, ref, atol=1e-4, rtol=1e-4)

    # Default bf16 compute path (fp32 MXU accumulation) — production path.
    out_bf16 = jax.block_until_ready(se_scale_conv1x1(x121, x125, w))
    assert out_bf16.shape == (N, Cout, H, W)
    assert jnp.allclose(out_bf16, ref, atol=5e-2, rtol=5e-2)

    print("KERNEL_OK")
</pallas_src>

<mosaic_0001>
module attributes {stable_mosaic.version = 11 : i64} {
  func.func @se_scale_conv1x1_kernel(%arg0: i32, %arg1: i32, %arg2: memref<1x1x288xf32, #tpu.memory_space<vmem>>, %arg3: memref<48x288xf32, #tpu.memory_space<vmem>>, %arg4: memref<1x288x196xf32, #tpu.memory_space<vmem>>, %arg5: memref<1x48x196xf32, #tpu.memory_space<vmem>>) attributes {dimension_semantics = [#tpu.dimension_semantics<parallel>, #tpu.dimension_semantics<parallel>], iteration_bounds = array<i64: 1, 1>, scalar_prefetch = 0 : i64, scratch_operands = 0 : i64, tpu.core_type = #tpu.core_type<tc>, window_params = [{transform_indices = @transform_0, window_bounds = array<i64: 1, 1, 288>}, {pipeline_mode = #tpu.pipeline_mode<synchronous>, transform_indices = @transform_1, window_bounds = array<i64: 48, 288>}, {transform_indices = @transform_2, window_bounds = array<i64: 1, 288, 196>}, {transform_indices = @transform_3, window_bounds = array<i64: 1, 48, 196>}]} {
    %c0 = arith.constant 0 : index
    %c0_0 = arith.constant 0 : index
    %c0_1 = arith.constant 0 : index
    %0 = vector.load %arg2[%c0, %c0_0, %c0_1] : memref<1x1x288xf32, #tpu.memory_space<vmem>>, vector<1x1x288xf32>
    %1 = vector.shape_cast %0 : vector<1x1x288xf32> to vector<1x288xf32>
    %2 = arith.negf %1 : vector<1x288xf32>
    %3 = math.exp %2 : vector<1x288xf32>
    %cst = arith.constant 1.000000e+00 : f32
    %4 = vector.broadcast %cst : f32 to vector<1x288xf32>
    %5 = arith.addf %4, %3 : vector<1x288xf32>
    %6 = arith.divf %4, %5 : vector<1x288xf32>
    %c0_2 = arith.constant 0 : index
    %c0_3 = arith.constant 0 : index
    %7 = vector.load %arg3[%c0_2, %c0_3] : memref<48x288xf32, #tpu.memory_space<vmem>>, vector<48x288xf32>
    %8 = vector.broadcast %6 : vector<1x288xf32> to vector<48x288xf32>
    %9 = arith.mulf %7, %8 : vector<48x288xf32>
    %c0_4 = arith.constant 0 : index
    %c0_5 = arith.constant 0 : index
    %c0_6 = arith.constant 0 : index
    %10 = vector.load %arg4[%c0_4, %c0_5, %c0_6] : memref<1x288x196xf32, #tpu.memory_space<vmem>>, vector<1x288x196xf32>
    %11 = vector.shape_cast %10 : vector<1x288x196xf32> to vector<288x196xf32>
    %cst_7 = arith.constant dense<0.000000e+00> : vector<48x196xf32>
    %12 = tpu.matmul %9, %11, %cst_7 {dimension_numbers = #tpu.dot_dimension_numbers<[1], [0], [0], [1], [0, 0, 1, 1], [], []>} : vector<48x288xf32>, vector<288x196xf32>, vector<48x196xf32> -> vector<48x196xf32>
    %c0_8 = arith.constant 0 : index
    %c0_9 = arith.constant 0 : index
    %c0_10 = arith.constant 0 : index
    %13 = vector.load %arg5[%c0_8, %c0_9, %c0_10] : memref<1x48x196xf32, #tpu.memory_space<vmem>>, vector<1x48x196xf32>
    %14 = vector.shape_cast %13 : vector<1x48x196xf32> to vector<48x196xf32>
    %15 = vector.shape_cast %12 : vector<48x196xf32> to vector<1x48x196xf32>
    tpu.vector_store %arg5[%c0_8, %c0_9, %c0_10], %15 {strides = array<i32>} : memref<1x48x196xf32, #tpu.memory_space<vmem>>, vector<1x48x196xf32>,
    return
  }
  func.func @transform_0(%arg0: i32, %arg1: i32) -> (i32, i32, i32) {
    %c0_i32 = arith.constant 0 : i32
    %c0_i32_0 = arith.constant 0 : i32
    %c0_i32_1 = arith.constant 0 : i32
    return %arg0, %c0_i32, %c0_i32_0 : i32, i32, i32
  }
  func.func @transform_1(%arg0: i32, %arg1: i32) -> (i32, i32) {
    %c0_i32 = arith.constant 0 : i32
    %c0_i32_0 = arith.constant 0 : i32
    %c0_i32_1 = arith.constant 0 : i32
    return %c0_i32, %c0_i32_0 : i32, i32
  }
  func.func @transform_2(%arg0: i32, %arg1: i32) -> (i32, i32, i32) {
    %c0_i32 = arith.constant 0 : i32
    %c0_i32_0 = arith.constant 0 : i32
    return %arg0, %c0_i32, %arg1 : i32, i32, i32
  }
  func.func @transform_3(%arg0: i32, %arg1: i32) -> (i32, i32, i32) {
    %c0_i32 = arith.constant 0 : i32
    %c0_i32_0 = arith.constant 0 : i32
    return %arg0, %c0_i32, %arg1 : i32, i32, i32
  }
}

</mosaic_0001>

<bundles_post_ra>
// kernel: tpu_custom_call.1
= control target key start
LH: loop header
LB: loop body
LE: loop exit
PB: predicated region body
PF: predicated region fallthrough
CT: control target
= control target key end

     0   :  { %8 = vsyncpa [#allocation3], 0  ;;  %s696_s0 = inlined_call_operand.hbm [shape: f32[1,1,288], index: 0, kind: input, shape index: {}]   ;;  %s697_s1 = inlined_call_operand.hbm [shape: f32[48,288], index: 1, kind: input, shape index: {}]   ;;  %s698_s2 = inlined_call_operand.hbm [shape: f32[1,288,196], index: 2, kind: input, shape index: {}]   ;;  %s699_s3 = inlined_call_operand.hbm [shape: f32[1,48,196], index: 3, kind: output, shape index: {}]  }
   0x1   :  { %9 = vsyncpa [#allocation6], 0  ;;  %s26_s14 = sshll.u32 %s697_s1, 4  ;;  %s27_s14 = int_to_ptr.hbm [resolvable:$true] %s26_s14 }
   0x2   :  { %10 = vsyncpa [#allocation4], 0  ;;  %s592_s15 = smov [#allocation5]   ;;  %s16_s19 = sshll.u32 %s696_s0, 4  ;;  %s17_s19 = int_to_ptr.hbm [resolvable:$true] %s16_s19 }
   0x3   :  { %s28_s16 = sshll.u32 %s592_s15, 4  ;;  %s593_s20 = smov 384   ;;  %s29_s16 = int_to_ptr.vmem [resolvable:$true] %s28_s16 }
   0x4   :  { %s594_s21 = smov 24   ;;  %s595_s22 = smov [#allocation2]  }
   0x5   :  { %34 = dma.hbm_to_vmem [thread:$0]  %s27_s14, 2304, %s29_s16, [#allocation6], %s593_s20, %s593_s20, %s594_s21  }
   0x6   :  { %s18_s23 = sshll.u32 %s595_s22, 4  ;;  %s39_s26 = sshll.u32 %s698_s2, 4  ;;  %s19_s23 = int_to_ptr.vmem [resolvable:$true] %s18_s23  ;;  %s40_s26 = int_to_ptr.hbm [resolvable:$true] %s39_s26 }
   0x7   :  { %21 = dma.hbm_to_vmem [thread:$0]  %s17_s19, 48, %s19_s23, [#allocation3]  }
   0x8   :  { %s596_s1 = smov [#allocation7]   ;;  %s597_s28 = smov 256  }
   0x9   :  { %s41_s27 = sshll.u32 %s596_s1, 4  ;;  %s598_s29 = smov 16   ;;  %s42_s27 = int_to_ptr.vmem [resolvable:$true] %s41_s27 }
   0xa   :  { %47 = dma.hbm_to_vmem [thread:$0]  %s40_s26, 9216, %s42_s27, [#allocation6], %s597_s28, %s597_s28, %s598_s29  }
   0xb   :  { %586 = dma.done.wait [#allocation3], 48  }
   0xc   :  { %587 = vsyncadd [#allocation3], 4294967248 }
   0xd   :  { %588 = dma.done.wait [#allocation6], 11520  }
   0xe   :  { %589 = vsyncadd [#allocation6], 4294955776  ;;  %v153_v0 = vld [vmem:[#allocation7 + $0xf0] sm:$0xff]  ;;  %v151_v2 = vld [vmem:[#allocation7 + $0xe0] sm:$0xff]  ;;  %vm195_vm4 = vcmask 261120   ;;  %vm425_vm5 = vcmask 556032  }
   0xf   :  { %v185_v1 = vld [vmem:[#allocation7 + $0x1f0] sm:$0xff]  ;;  %214 = vmatpush.msra.mxu0 %v153_v0  ;;  %v183_v3 = vld [vmem:[#allocation7 + $0x1e0] sm:$0xff]  ;;  %v60_v17 = vld [vmem:[#allocation2] sm:$0x7]  ;;  %s599_s0 = smov [#allocation8]   ;;  %s443_s5 = sshll.u32 %s699_s3, 4  ;;  %s444_s5 = int_to_ptr.hbm [resolvable:$true] %s443_s5 }
  0x10   :  { %249 = vmatpush.msra.mxu1 %v185_v1  ;;  %v149_v4 = vld [vmem:[#allocation7 + $0xd0] sm:$0xff]  ;;  %v147_v6 = vld [vmem:[#allocation7 + $0xc0] sm:$0xff]  ;;  %v457_v19 = vmul.f32 -1.442695, %v60_v17  ;;  %v186_v22 = vld [vmem:[#allocation7 + $0x1f8] sm:$0xff]  ;;  %s441_s2 = sshll.u32 %s599_s0, 4  ;;  %s442_s2 = int_to_ptr.vmem [resolvable:$true] %s441_s2 }
  0x11   :  { %v181_v5 = vld [vmem:[#allocation7 + $0x1d0] sm:$0xff]  ;;  %215 = vmatpush.msra.mxu0 %v151_v2  ;;  %v179_v7 = vld [vmem:[#allocation7 + $0x1c0] sm:$0xff]  ;;  %v154_v23 = vld [vmem:[#allocation7 + $0xf8] sm:$0xff] }
  0x12   :  { %250 = vmatpush.msra.mxu1 %v183_v3  ;;  %v145_v8 = vld [vmem:[#allocation7 + $0xb0] sm:$0xff]  ;;  %v143_v11 = vld [vmem:[#allocation7 + $0xa0] sm:$0xff]  ;;  %486 = vpow2.f32 %v457_v19  ;;  %319 = vmatpush.msra.mxu3 %v154_v23  ;;  %v152_v26 = vld [vmem:[#allocation7 + $0xe8] sm:$0xff] }
  0x13   :  { %216 = vmatpush.msra.mxu0 %v149_v4  ;;  %v177_v9 = vld [vmem:[#allocation7 + $0x1b0] sm:$0xff]  ;;  %v175_v12 = vld [vmem:[#allocation7 + $0x1a0] sm:$0xff]  ;;  %v184_v27 = vld [vmem:[#allocation7 + $0x1e8] sm:$0xff] }
  0x14   :  { %251 = vmatpush.msra.mxu1 %v181_v5  ;;  %v193_v10 = vld [vmem:[#allocation7 + $0x230] sm:$0xff]  ;;  %v191_v13 = vld [vmem:[#allocation7 + $0x220] sm:$0xff]  ;;  %v150_v28 = vld [vmem:[#allocation7 + $0xd8] sm:$0xff]  ;;  %320 = vmatpush.msra.mxu3 %v152_v26 }
  0x15   :  { %217 = vmatpush.msra.mxu0 %v147_v6  ;;  %296 = vmatpush.msra.mxu2 %v193_v10  ;;  %v189_v14 = vld [vmem:[#allocation7 + $0x210] sm:$0xff]  ;;  %v187_v18 = vld [vmem:[#allocation7 + $0x200] sm:$0xff]  ;;  %v182_v31 = vld [vmem:[#allocation7 + $0x1d8] sm:$0xff] }
  0x16   :  { %252 = vmatpush.msra.mxu1 %v179_v7  ;;  %v141_v15 = vld [vmem:[#allocation7 + $0x90] sm:$0xff]  ;;  %v139_v20 = vld [vmem:[#allocation7 + $0x80] sm:$0xff]  ;;  %321 = vmatpush.msra.mxu3 %v150_v28  ;;  %v148_v35 = vld [vmem:[#allocation7 + $0xc8] sm:$0xff] }
  0x17   :  { %218 = vmatpush.msra.mxu0 %v145_v8  ;;  %v173_v16 = vld [vmem:[#allocation7 + $0x190] sm:$0xff]  ;;  %297 = vmatpush.msra.mxu2 %v191_v13  ;;  %v171_v21 = vld [vmem:[#allocation7 + $0x180] sm:$0xff]  ;;  %v180_v36 = vld [vmem:[#allocation7 + $0x1c8] sm:$0xff] }
  0x18   :  { %253 = vmatpush.msra.mxu1 %v177_v9  ;;  %v137_v24 = vld [vmem:[#allocation7 + $0x70] sm:$0xff]  ;;  %v135_v29 = vld [vmem:[#allocation7 + $0x60] sm:$0xff]  ;;  %v487_v34 = vpop.eup %486  ;;  %v146_v37 = vld [vmem:[#allocation7 + $0xb8] sm:$0xff]  ;;  %322 = vmatpush.msra.mxu3 %v148_v35 }
  0x19   :  { %219 = vmatpush.msra.mxu0 %v143_v11  ;;  %298 = vmatpush.msra.mxu2 %v189_v14  ;;  %v169_v25 = vld [vmem:[#allocation7 + $0x170] sm:$0xff]  ;;  %v167_v30 = vld [vmem:[#allocation7 + $0x160] sm:$0xff]  ;;  %v64_v40 = vadd.f32 1.0, %v487_v34  ;;  %v178_v41 = vld [vmem:[#allocation7 + $0x1b8] sm:$0xff] }
  0x1a   :  { %254 = vmatpush.msra.mxu1 %v175_v12  ;;  %v133_v32 = vld [vmem:[#allocation7 + $0x50] sm:$0xff]  ;;  %v131_v38 = vld [vmem:[#allocation7 + $0x40] sm:$0xff]  ;;  %v144_v42 = vld [vmem:[#allocation7 + $0xa8] sm:$0xff]  ;;  %323 = vmatpush.msra.mxu3 %v146_v37 }
  0x1b   :  { %220 = vmatpush.msra.mxu0 %v141_v15  ;;  %299 = vmatpush.msra.mxu2 %v187_v18  ;;  %v165_v33 = vld [vmem:[#allocation7 + $0x150] sm:$0xff]  ;;  %v163_v39 = vld [vmem:[#allocation7 + $0x140] sm:$0xff]  ;;  %488 = vrcp.f32 %v64_v40  ;;  %v142_v45 = vld [vmem:[#allocation7 + $0x98] sm:$0xff]  ;;  %v76_v60 = vand.u32 2147483648, %v64_v40  ;;  %vm70_vm0 = vweird.f32 %v64_v40  ;;  %v74_v62 = vand.u32 2147483647, %v64_v40 }
  0x1c   :  { %255 = vmatpush.msra.mxu1 %v173_v16  ;;  %v129_v43 = vld [vmem:[#allocation7 + $0x30] sm:$0xff]  ;;  %v176_v46 = vld [vmem:[#allocation7 + $0x1a8] sm:$0xff]  ;;  %v127_v47 = vld [vmem:[#allocation7 + $0x20] sm:$0xff]  ;;  %324 = vmatpush.msra.mxu3 %v144_v42 }
  0x1d   :  { %221 = vmatpush.msra.mxu0 %v139_v20  ;;  %354 = vmatpush.msrb.mxu2 %v186_v22  ;;  %v161_v44 = vld [vmem:[#allocation7 + $0x130] sm:$0xff]  ;;  %v159_v48 = vld [vmem:[#allocation7 + $0x120] sm:$0xff]  ;;  %v140_v51 = vld [vmem:[#allocation7 + $0x88] sm:$0xff]  ;;  %v77_v1 = vor.u32 1.1754944e-38, %v76_v60  ;;  %vm75_vm3 = vcmp.eq.f32.partialorder %v74_v62, 8.507059e+37 }
  0x1e   :  { %256 = vmatpush.msra.mxu1 %v171_v21  ;;  %v125_v49 = vld [vmem:[#allocation7 + $0x10] sm:$0xff]  ;;  %325 = vmatpush.msra.mxu3 %v142_v45  ;;  %v174_v52 = vld [vmem:[#allocation7 + $0x198] sm:$0xff]  ;;  %v123_v55 = vld [vmem:[#allocation7] sm:$0xff] }
  0x1f   :  { %222 = vmatpush.msra.mxu0 %v137_v24  ;;  %355 = vmatpush.msrb.mxu2 %v184_v27  ;;  %v157_v50 = vld [vmem:[#allocation7 + $0x110] sm:$0xff]  ;;  %v138_v53 = vld [vmem:[#allocation7 + $0x78] sm:$0xff]  ;;  %v155_v56 = vld [vmem:[#allocation7 + $0x100] sm:$0xff] }
  0x20   :  { %257 = vmatpush.msra.mxu1 %v169_v25  ;;  %326 = vmatpush.msra.mxu3 %v140_v51  ;;  %v136_v58 = vld [vmem:[#allocation7 + $0x68] sm:$0xff]  ;;  %v134_v63 = vld [vmem:[#allocation7 + $0x58] sm:$0xff]  ;;  %v82_v11 = vld [vmem:[#allocation5 + $0x10] sm:$0xff] }
  0x21   :  { %223 = vmatpush.msra.mxu0 %v135_v29  ;;  %356 = vmatpush.msrb.mxu2 %v182_v31  ;;  %v489_v54 = vpop.eup %488  ;;  %v172_v59 = vld [vmem:[#allocation7 + $0x188] sm:$0xff]  ;;  %v170_v3 = vld [vmem:[#allocation7 + $0x178] sm:$0xff]  ;;  %v80_v12 = vld [vmem:[#allocation5] sm:$0xff] }
  0x22   :  { %258 = vmatpush.msra.mxu1 %v167_v30  ;;  %v66_v57 = vmul.f32 %v489_v54, %v64_v40  ;;  %327 = vmatpush.msra.mxu3 %v138_v53  ;;  %vm71_vm1 = vweird.f32 %v489_v54  ;;  %v132_v4 = vld [vmem:[#allocation7 + $0x48] sm:$0xff]  ;;  %v130_v5 = vld [vmem:[#allocation7 + $0x38] sm:$0xff]  ;;  %v84_v27 = vld [vmem:[#allocation5 + $0x20] sm:$0xff] }
  0x23   :  { %224 = vmatpush.msra.mxu0 %v133_v32  ;;  %357 = vmatpush.msrb.mxu2 %v180_v36  ;;  %vm72_vm2 = vmor %vm70_vm0, %vm71_vm1  ;;  %v168_v6 = vld [vmem:[#allocation7 + $0x168] sm:$0xff]  ;;  %v166_v9 = vld [vmem:[#allocation7 + $0x158] sm:$0xff] }
  0x24   :  { %259 = vmatpush.msra.mxu1 %v165_v33  ;;  %v67_v61 = vsub.f32 1.0, %v66_v57  ;;  %328 = vmatpush.msra.mxu3 %v136_v58  ;;  %v128_v8 = vld [vmem:[#allocation7 + $0x28] sm:$0xff]  ;;  %v81_v13 = vld [vmem:[#allocation5 + $0x8] sm:$0xff]  ;;  %v88_v32 = vld [vmem:[#allocation5 + $0x40] sm:$0xff] }
  0x25   :  { %225 = vmatpush.msra.mxu0 %v131_v38  ;;  %358 = vmatpush.msrb.mxu2 %v178_v41  ;;  %v126_v17 = vld [vmem:[#allocation7 + $0x18] sm:$0xff]  ;;  %v124_v22 = vld [vmem:[#allocation7 + $0x8] sm:$0xff]  ;;  %v86_v34 = vld [vmem:[#allocation5 + $0x30] sm:$0xff] }
  0x26   :  { %260 = vmatpush.msra.mxu1 %v163_v39  ;;  %v68_v0 = vmul.f32 %v489_v54, %v67_v61  ;;  %329 = vmatpush.msra.mxu3 %v134_v63  ;;  %v194_v21 = vld [vmem:[#allocation7 + $0x238] sm:$0xff]  ;;  %v164_v23 = vld [vmem:[#allocation7 + $0x148] sm:$0xff]  ;;  %v90_v45 = vld [vmem:[#allocation5 + $0x50] sm:$0xff] }
  0x27   :  { %226 = vmatpush.msra.mxu0 %v129_v43  ;;  %359 = vmatpush.msrb.mxu2 %v176_v46  ;;  %v85_v24 = vld [vmem:[#allocation5 + $0x28] sm:$0xff]  ;;  %v83_v25 = vld [vmem:[#allocation5 + $0x18] sm:$0xff]  ;;  %v96_v57 = vld [vmem:[#allocation5 + $0x80] sm:$0xff] }
  0x28   :  { %261 = vmatpush.msra.mxu1 %v161_v44  ;;  %v69_v2 = vadd.f32 %v489_v54, %v68_v0  ;;  %330 = vmatpush.msra.mxu3 %v132_v4  ;;  %v162_v26 = vld [vmem:[#allocation7 + $0x138] sm:$0xff]  ;;  %v160_v28 = vld [vmem:[#allocation7 + $0x128] sm:$0xff] }
  0x29   :  { %227 = vmatpush.msra.mxu0 %v127_v47  ;;  %360 = vmatpush.msrb.mxu2 %v174_v52  ;;  %v158_v33 = vld [vmem:[#allocation7 + $0x118] sm:$0xff]  ;;  %v192_v35 = vld [vmem:[#allocation7 + $0x228] sm:$0xff] }
  0x2a   :  { %262 = vmatpush.msra.mxu1 %v159_v48  ;;  %v73_v7 = vsel %vm72_vm2, %v489_v54, %v69_v2  ;;  %331 = vmatpush.msra.mxu3 %v130_v5  ;;  %v156_v36 = vld [vmem:[#allocation7 + $0x108] sm:$0xff]  ;;  %v190_v41 = vld [vmem:[#allocation7 + $0x218] sm:$0xff] }
  0x2b   :  { %228 = vmatpush.msra.mxu0 %v125_v49  ;;  %361 = vmatpush.msrb.mxu2 %v172_v59  ;;  %v78_v10 = vsel %vm75_vm3, %v77_v1, %v73_v7  ;;  %v87_v37 = vld [vmem:[#allocation5 + $0x38] sm:$0xff]  ;;  %v89_v44 = vld [vmem:[#allocation5 + $0x48] sm:$0xff]  ;;  %v94_v49 = vld [vmem:[#allocation5 + $0x70] sm:$0xff] }
  0x2c   :  { %263 = vmatpush.msra.mxu1 %v157_v50  ;;  %v632_v14 = vperm.slane %v78_v10, 2  ;;  %v634_v15 = vperm.slane %v78_v10, 0  ;;  %v636_v16 = vperm.slane %v78_v10, 1  ;;  %332 = vmatpush.msra.mxu3 %v128_v8  ;;  %v188_v42 = vld [vmem:[#allocation7 + $0x208] sm:$0xff]  ;;  %v92_v50 = vld [vmem:[#allocation5 + $0x60] sm:$0xff]  ;;  %v93_v51 = vld [vmem:[#allocation5 + $0x68] sm:$0xff] }
  0x2d   :  { %229 = vmatpush.msra.mxu0 %v123_v55  ;;  %362 = vmatpush.msrb.mxu2 %v170_v3  ;;  %v91_v43 = vld [vmem:[#allocation5 + $0x58] sm:$0xff]  ;;  %v97_v55 = vld [vmem:[#allocation5 + $0x88] sm:$0xff] }
  0x2e   :  { %264 = vmatpush.msra.mxu1 %v155_v56  ;;  %v639_v18 = vmul.f32 %v632_v14, %v82_v11  ;;  %v105_v19 = vmul.f32 %v634_v15, %v80_v12  ;;  %v643_v20 = vmul.f32 %v636_v16, %v81_v13  ;;  %333 = vmatpush.msra.mxu3 %v126_v17  ;;  %v95_v56 = vld [vmem:[#allocation5 + $0x78] sm:$0xff] }
  0x2f   :  { %363 = vmatpush.msrb.mxu2 %v168_v6  ;;  %401 = vmatpush.msrb.mxu0 %v194_v21  ;;  %v649_v29 = vmul.f32 %v632_v14, %v85_v24  ;;  %v108_v30 = vmul.f32 %v634_v15, %v83_v25  ;;  %v653_v31 = vmul.f32 %v636_v16, %v84_v27 }
  0x30   :  { %458 = vmatmul.msk.f32.vlgmr.msra.gmra.mxu2 %vm195_vm4, %v639_v18  ;;  %230 = vmatmul.f32.vlgmr.msra.gmra.mxu0 %v105_v19  ;;  %v113_v38 = vmul.f32 %v632_v14, %v88_v32  ;;  %v111_v39 = vmul.f32 %v634_v15, %v86_v34  ;;  %v112_v40 = vmul.f32 %v636_v16, %v87_v37 }
  0x31   :  { %364 = vmatpush.msrb.mxu2 %v166_v9  ;;  %265 = vmatmul.f32.vlgmr.msra.gmra.mxu1 %v643_v20  ;;  %v116_v46 = vmul.f32 %v632_v14, %v91_v43  ;;  %v114_v47 = vmul.f32 %v634_v15, %v89_v44  ;;  %v115_v48 = vmul.f32 %v636_v16, %v90_v45 }
  0x32   :  { %334 = vmatpush.msra.mxu3 %v124_v22  ;;  %470 = vmatpush.msrb.mxu1 %v194_v21  ;;  %v119_v52 = vmul.f32 %v632_v14, %v94_v49  ;;  %v117_v53 = vmul.f32 %v634_v15, %v92_v50  ;;  %v118_v54 = vmul.f32 %v636_v16, %v93_v51 }
  0x33   :  { %365 = vmatpush.msrb.mxu2 %v164_v23  ;;  %335 = vmatmul.f32.vlgmr.msra.gmra.mxu3 %v105_v19  ;;  %v122_v58 = vmul.f32 %v632_v14, %v97_v55  ;;  %v120_v59 = vmul.f32 %v634_v15, %v95_v56  ;;  %v121_v60 = vmul.f32 %v636_v16, %v96_v57 }
  0x34   :  { %471 = vmatpush.msrb.mxu3 %v194_v21  ;;  %472 = vmatpush.msrb.mxu1 %v192_v35 }
  0x35   :  { %366 = vmatpush.msrb.mxu2 %v162_v26  ;;  %402 = vmatpush.msrb.mxu0 %v192_v35 }
  0x36   :  { %473 = vmatpush.msrb.mxu3 %v192_v35  ;;  %474 = vmatpush.msrb.mxu1 %v190_v41 }
  0x37   :  { %367 = vmatpush.msrb.mxu2 %v160_v28  ;;  %403 = vmatpush.msrb.mxu0 %v190_v41 }
  0x38   :  { %459 = vmatmul.msk.f32.gmra.mxu2 %vm195_vm4, %v649_v29  ;;  %233 = vmatmul.f32.gmra.mxu0 %v108_v30 }
  0x39   :  { %268 = vmatmul.f32.gmra.mxu1 %v653_v31  ;;  %368 = vmatpush.msrb.mxu2 %v158_v33 }
  0x3a   :  { %475 = vmatpush.msrb.mxu3 %v190_v41  ;;  %404 = vmatpush.msrb.mxu0 %v188_v42 }
  0x3b   :  { %338 = vmatmul.f32.gmra.mxu3 %v108_v30  ;;  %369 = vmatpush.msrb.mxu2 %v156_v36 }
  0x3c   :  { %476 = vmatpush.msrb.mxu1 %v188_v42  ;;  %477 = vmatpush.msrb.mxu3 %v188_v42 }
  0x40   :  { %460 = vmatmul.msk.f32.gmra.mxu2 %vm195_vm4, %v113_v38  ;;  %236 = vmatmul.f32.gmra.mxu0 %v111_v39 }
  0x41   :  { %271 = vmatmul.f32.gmra.mxu1 %v112_v40 }
  0x43   :  { %341 = vmatmul.f32.gmra.mxu3 %v111_v39 }
  0x48   :  { %461 = vmatmul.msk.f32.gmra.mxu2 %vm195_vm4, %v116_v46  ;;  %239 = vmatmul.f32.gmra.mxu0 %v114_v47 }
  0x49   :  { %274 = vmatmul.f32.gmra.mxu1 %v115_v48 }
  0x4b   :  { %344 = vmatmul.f32.gmra.mxu3 %v114_v47 }
  0x50   :  { %462 = vmatmul.msk.f32.gmra.mxu2 %vm195_vm4, %v119_v52  ;;  %242 = vmatmul.f32.gmra.mxu0 %v117_v53 }
  0x51   :  { %277 = vmatmul.f32.gmra.mxu1 %v118_v54 }
  0x53   :  { %347 = vmatmul.f32.gmra.mxu3 %v117_v53 }
  0x58   :  { %463 = vmatmul.msk.f32.gmra.mxu2 %vm195_vm4, %v122_v58  ;;  %245 = vmatmul.f32.gmra.mxu0 %v120_v59 }
  0x59   :  { %280 = vmatmul.f32.gmra.mxu1 %v121_v60 }
  0x5b   :  { %350 = vmatmul.f32.gmra.mxu3 %v120_v59 }
  0x60   :  { %370 = vmatmul.f32.vlgmr.msrb.gmra.mxu2 %v643_v20  ;;  %464 = vmatmul.msk.f32.vlgmr.msrb.gmra.mxu0 %vm195_vm4, %v639_v18 }
  0x61   :  { %465 = vmatmul.msk.f32.vlgmr.msrb.gmra.mxu1 %vm195_vm4, %v649_v29 }
  0x63   :  { %468 = vmatmul.msk.f32.vlgmr.msrb.gmra.mxu3 %vm195_vm4, %v119_v52 }
  0x68   :  { %373 = vmatmul.f32.gmra.mxu2 %v653_v31 }
  0x69   :  { %466 = vmatmul.msk.f32.gmra.mxu1 %vm195_vm4, %v113_v38 }
  0x6b   :  { %469 = vmatmul.msk.f32.gmra.mxu3 %vm195_vm4, %v122_v58 }
  0x70   :  { %376 = vmatmul.f32.gmra.mxu2 %v112_v40 }
  0x71   :  { %467 = vmatmul.msk.f32.gmra.mxu1 %vm195_vm4, %v116_v46 }
  0x78   :  { %379 = vmatmul.f32.gmra.mxu2 %v115_v48 }
  0x80   :  { %382 = vmatmul.f32.gmra.mxu2 %v118_v54 }
  0x88   :  { %385 = vmatmul.f32.gmra.mxu2 %v121_v60 }
  0xad   :  { %v231_v61 = vpop.f32.mrf.mxu0 }
  0xae   :  { %v266_v62 = vpop.f32.mrf.mxu1 }
  0xaf   :  { %v267_v63 = vadd.f32 %v266_v62, %v231_v61 }
  0xb3   :  { %v301_v0 = vpop.f32.mrf.mxu2 }
  0xb4   :  { %v302_v1 = vadd.f32 %v301_v0, %v267_v63 }
  0xb5   :  { %v234_v2 = vpop.f32.mrf.mxu0 }
  0xb6   :  { %424 = vst [vmem:[#allocation8] sm:$0xff] %v302_v1  ;;  %v269_v3 = vpop.f32.mrf.mxu1  ;;  %v336_v12 = vpop.f32.mrf.mxu3 }
  0xb7   :  { %v270_v4 = vadd.f32 %v269_v3, %v234_v2 }
  0xbb   :  { %v304_v5 = vpop.f32.mrf.mxu2 }
  0xbc   :  { %v305_v6 = vadd.f32 %v304_v5, %v270_v4 }
  0xbd   :  { %v237_v7 = vpop.f32.mrf.mxu0 }
  0xbe   :  { %427 = vst [vmem:[#allocation8 + $0x10] sm:$0xff] %v305_v6  ;;  %v272_v8 = vpop.f32.mrf.mxu1  ;;  %v339_v20 = vpop.f32.mrf.mxu3 }
  0xbf   :  { %v273_v9 = vadd.f32 %v272_v8, %v237_v7 }
  0xc3   :  { %v307_v10 = vpop.f32.mrf.mxu2 }
  0xc4   :  { %v308_v11 = vadd.f32 %v307_v10, %v273_v9 }
  0xc5   :  { %v240_v13 = vpop.f32.mrf.mxu0 }
  0xc6   :  { %429 = vst [vmem:[#allocation8 + $0x20] sm:$0xff] %v308_v11  ;;  %v275_v14 = vpop.f32.mrf.mxu1  ;;  %v342_v27 = vpop.f32.mrf.mxu3 }
  0xc7   :  { %v276_v15 = vadd.f32 %v275_v14, %v240_v13 }
  0xcb   :  { %v310_v16 = vpop.f32.mrf.mxu2 }
  0xcc   :  { %v311_v17 = vadd.f32 %v310_v16, %v276_v15 }
  0xcd   :  { %v243_v18 = vpop.f32.mrf.mxu0 }
  0xce   :  { %431 = vst [vmem:[#allocation8 + $0x30] sm:$0xff] %v311_v17  ;;  %v278_v19 = vpop.f32.mrf.mxu1  ;;  %v345_v30 = vpop.f32.mrf.mxu3 }
  0xcf   :  { %v279_v21 = vadd.f32 %v278_v19, %v243_v18 }
  0xd3   :  { %v313_v22 = vpop.f32.mrf.mxu2 }
  0xd4   :  { %v314_v23 = vadd.f32 %v313_v22, %v279_v21 }
  0xd5   :  { %v246_v24 = vpop.f32.mrf.mxu0 }
  0xd6   :  { %433 = vst [vmem:[#allocation8 + $0x40] sm:$0xff] %v314_v23  ;;  %v281_v25 = vpop.f32.mrf.mxu1  ;;  %v348_v38 = vpop.f32.mrf.mxu3 }
  0xd7   :  { %v282_v26 = vadd.f32 %v281_v25, %v246_v24 }
  0xdb   :  { %v316_v28 = vpop.f32.mrf.mxu2 }
  0xdc   :  { %v317_v29 = vadd.f32 %v316_v28, %v282_v26 }
  0xdd   :  { %v406_v32 = vpop.f32.mrf.mxu0 }
  0xde   :  { %435 = vst [vmem:[#allocation8 + $0x50] sm:$0xff] %v317_v29  ;;  %v409_v35 = vpop.f32.mrf.mxu1  ;;  %v351_v44 = vpop.f32.mrf.mxu3 }
  0xe3   :  { %v371_v31 = vpop.f32.mrf.mxu2 }
  0xe4   :  { %v372_v33 = vadd.f32 %v371_v31, %v336_v12 }
  0xe6   :  { %v407_v34 = vadd.f32 %v406_v32, %v372_v33  ;;  %v412_v40 = vpop.f32.mrf.mxu1  ;;  %v418_v49 = vpop.f32.mrf.mxu3 }
  0xe8   :  { %426 = vst.msk [vmem:[#allocation8 + $0x8] sm:$0xff] %vm425_vm5, %v407_v34 }
  0xeb   :  { %v374_v36 = vpop.f32.mrf.mxu2 }
  0xec   :  { %v375_v37 = vadd.f32 %v374_v36, %v339_v20 }
  0xee   :  { %v410_v39 = vadd.f32 %v409_v35, %v375_v37  ;;  %v415_v46 = vpop.f32.mrf.mxu1  ;;  %v421_v54 = vpop.f32.mrf.mxu3 }
  0xf0   :  { %428 = vst.msk [vmem:[#allocation8 + $0x18] sm:$0xff] %vm425_vm5, %v410_v39 }
  0xf3   :  { %v377_v41 = vpop.f32.mrf.mxu2 }
  0xf4   :  { %v378_v42 = vadd.f32 %v377_v41, %v342_v27 }
  0xf6   :  { %v413_v43 = vadd.f32 %v412_v40, %v378_v42 }
  0xf8   :  { %430 = vst.msk [vmem:[#allocation8 + $0x28] sm:$0xff] %vm425_vm5, %v413_v43 }
  0xfb   :  { %v380_v45 = vpop.f32.mrf.mxu2 }
  0xfc   :  { %v381_v47 = vadd.f32 %v380_v45, %v345_v30 }
  0xfe   :  { %v416_v48 = vadd.f32 %v415_v46, %v381_v47 }
 0x100   :  { %432 = vst.msk [vmem:[#allocation8 + $0x38] sm:$0xff] %vm425_vm5, %v416_v48 }
 0x103   :  { %v383_v50 = vpop.f32.mrf.mxu2 }
 0x104   :  { %v384_v51 = vadd.f32 %v383_v50, %v348_v38 }
 0x106   :  { %v419_v52 = vadd.f32 %v418_v49, %v384_v51 }
 0x108   :  { %434 = vst.msk [vmem:[#allocation8 + $0x48] sm:$0xff] %vm425_vm5, %v419_v52 }
 0x10b   :  { %v386_v53 = vpop.f32.mrf.mxu2 }
 0x10c   :  { %v387_v55 = vadd.f32 %v386_v53, %v351_v44 }
 0x10e   :  { %v422_v56 = vadd.f32 %v421_v54, %v387_v55 }
 0x110   :  { %436 = vst.msk [vmem:[#allocation8 + $0x58] sm:$0xff] %vm425_vm5, %v422_v56 }
 0x111   :  { %449 = dma.vmem_to_hbm [thread:$0]  %s442_s2, 1536, %s444_s5, [#allocation4], %s597_s28, %s597_s28, %s598_s29  }
 0x112   :  { %590 = dma.done.wait [#allocation4], 1536  }
 0x113   :  { %591 = vsyncadd [#allocation4], 4294965760 }
 0x114   :  { %454 = vsyncpa [#allocation3], 1 }
 0x115   :  { %455 = vsyncpa [#allocation6], 1 }
 0x116   :  { %456 = vsyncpa [#allocation4], 1 }

</bundles_post_ra>
